<compile_context>
chip_gen: v5e
topology: v5e:2x2
jax: 0.10.0
libtpu: 0.0.40
codegen_flags: <defaults>
</compile_context>

<pallas_src>
import functools

import jax
import jax.numpy as jnp
from jax.experimental import pallas as pl
from jax.experimental.pallas import tpu as pltpu


def _round_up(x, m):
    return ((x + m - 1) // m) * m


# --------------------------------------------------------------------------- #
# Kernel
# --------------------------------------------------------------------------- #
def _make_fc_kernel(n_layers):
    """Fused kernel: refs = (x, w0, b0, w1, b1, ..., out)."""

    def kernel(x_ref, *refs):
        out_ref = refs[-1]
        h = x_ref[...]                                   # [tm, K0_pad], f32
        for l in range(n_layers):
            w = refs[2 * l][...]                         # [K_pad, N_pad] (f32 or bf16)
            b = refs[2 * l + 1][...]                     # [1, N_pad], f32
            acc = jnp.dot(h.astype(w.dtype), w,
                          preferred_element_type=jnp.float32)
            acc = acc + b                                # bias in f32, once
            h = 0.5 * (jnp.tanh(0.5 * acc) + 1.0)        # sigmoid, single EUP op
        out_ref[...] = h.astype(out_ref.dtype)

    return kernel


# --------------------------------------------------------------------------- #
# Params
# --------------------------------------------------------------------------- #
def init_fc_params(key, layer_shapes, dtype=jnp.float32):
    """Torch-style nn.Linear params: (W[out,in], b[out]) per (in, out) tuple."""
    params = []
    for (fan_in, fan_out) in layer_shapes:
        key, kw, kb = jax.random.split(key, 3)
        bound = 1.0 / (fan_in ** 0.5)
        w = jax.random.uniform(kw, (fan_out, fan_in), dtype, -bound, bound)
        b = jax.random.uniform(kb, (fan_out,), dtype, -bound, bound)
        params.append((w, b))
    return params


def prepare_params(params, compute_dtype=jnp.float32):
    """One-time transform to kernel layout: W^T zero-padded to [K_pad, N_pad]
    (multiples of 128, lane-dense) and bias zero-padded to [1, N_pad] (f32).
    Zero padding is exact: padded activation columns (sigmoid(0)=0.5) only ever
    multiply zero-padded weight rows of the next layer."""
    layers = []
    for (w, b) in params:
        fan_out, fan_in = w.shape
        k_pad = _round_up(fan_in, 128)
        n_pad = _round_up(fan_out, 128)
        wt = jnp.zeros((k_pad, n_pad), compute_dtype)
        wt = wt.at[:fan_in, :fan_out].set(w.T.astype(compute_dtype))
        bp = jnp.zeros((1, n_pad), jnp.float32)
        bp = bp.at[:, :fan_out].set(b.astype(jnp.float32))
        layers.append((wt, bp))
    n_out = params[-1][0].shape[0]
    return layers, n_out


# --------------------------------------------------------------------------- #
# Forward
# --------------------------------------------------------------------------- #
@functools.partial(jax.jit, static_argnums=(2,))
def _fc_forward_padded(x_p, flat_wb, meta):
    (tm, k0_pad, n_out_pad, block_dims, n_layers) = meta
    m_pad = x_p.shape[0]

    in_specs = [pl.BlockSpec((tm, k0_pad), lambda i: (i, 0))]
    for (k_pad, n_pad) in block_dims:
        in_specs.append(pl.BlockSpec((k_pad, n_pad), lambda i: (0, 0)))  # weight: resident
        in_specs.append(pl.BlockSpec((1, n_pad), lambda i: (0, 0)))      # bias:   resident

    return pl.pallas_call(
        _make_fc_kernel(n_layers),
        out_shape=jax.ShapeDtypeStruct((m_pad, n_out_pad), x_p.dtype),
        grid=(m_pad // tm,),
        in_specs=in_specs,
        out_specs=pl.BlockSpec((tm, n_out_pad), lambda i: (i, 0)),
        compiler_params=pltpu.CompilerParams(
            dimension_semantics=("parallel",),       # megacore-shard batch on v7x
            vmem_limit_bytes=32 * 1024 * 1024,       # safe on v5e/v6e/v7x
        ),
    )(x_p, *flat_wb)


def fc_forward(prepped, x):
    """FC.forward: every layer (including the last) is Linear followed by Sigmoid."""
    layers, n_out = prepped
    m, k = x.shape
    k0_pad = layers[0][0].shape[0]
    n_out_pad = layers[-1][0].shape[1]
    assert k <= k0_pad, "input feature dim does not match first layer"

    # Keep total resident weight footprint well inside VMEM for this fused design.
    wbytes = sum(w.size * w.dtype.itemsize + b.size * 4 for (w, b) in layers)
    assert wbytes < 16 * 1024 * 1024, "layers too large for fully-resident fusion"

    tm = min(128, _round_up(m, 8))
    m_pad = _round_up(m, tm)
    x_p = jnp.pad(x, ((0, m_pad - m), (0, k0_pad - k)))   # zero-pad batch & lanes

    flat_wb = []
    block_dims = []
    for (wt, b) in layers:
        flat_wb.extend([wt, b])
        block_dims.append(tuple(wt.shape))

    meta = (tm, k0_pad, n_out_pad, tuple(block_dims), len(layers))
    out = _fc_forward_padded(x_p, tuple(flat_wb), meta)
    return out[:m, :n_out]


def fc_forward_ref(params, x):
    h = x
    for (w, b) in params:
        h = jax.nn.sigmoid(h @ w.T + b)
    return h


# --------------------------------------------------------------------------- #
# Self-test
# --------------------------------------------------------------------------- #
if __name__ == "__main__":
    key = jax.random.PRNGKey(0)
    layer_shapes = [(32, 64), (64, 16)]       # FC(layer_shapes=[(32,64),(64,16)])
    batch = 256                               # -> grid=(2,) batch tiles of 128

    kx, kp = jax.random.split(key)
    x = jax.random.normal(kx, (batch, layer_shapes[0][0]), jnp.float32)
    params = init_fc_params(kp, layer_shapes)
    y_ref = fc_forward_ref(params, x)

    # f32 MXU path (exact-ish).
    prepped_f32 = prepare_params(params, jnp.float32)
    y = jax.block_until_ready(fc_forward(prepped_f32, x))
    assert y.shape == (batch, layer_shapes[-1][1])
    assert jnp.allclose(y, y_ref, atol=1e-5, rtol=1e-5)

    # bf16 MXU fast path (v6e/v7x): bf16 inputs, f32 accumulate -> looser tol.
    prepped_bf16 = prepare_params(params, jnp.bfloat16)
    y_bf16 = jax.block_until_ready(fc_forward(prepped_bf16, x))
    assert y_bf16.shape == (batch, layer_shapes[-1][1])
    assert jnp.allclose(y_bf16, y_ref, atol=2e-2, rtol=2e-2)

    print("KERNEL_OK")
</pallas_src>

<mosaic_0001>
module attributes {stable_mosaic.version = 11 : i64} {
  func.func @kernel(%arg0: i32, %arg1: memref<128x128xf32, #tpu.memory_space<vmem>>, %arg2: memref<128x128xf32, #tpu.memory_space<vmem>>, %arg3: memref<1x128xf32, #tpu.memory_space<vmem>>, %arg4: memref<128x128xf32, #tpu.memory_space<vmem>>, %arg5: memref<1x128xf32, #tpu.memory_space<vmem>>, %arg6: memref<128x128xf32, #tpu.memory_space<vmem>>) attributes {dimension_semantics = [#tpu.dimension_semantics<parallel>], iteration_bounds = array<i64: 2>, scalar_prefetch = 0 : i64, scratch_operands = 0 : i64, tpu.core_type = #tpu.core_type<tc>, window_params = [{transform_indices = @transform_0, window_bounds = array<i64: 128, 128>}, {pipeline_mode = #tpu.pipeline_mode<synchronous>, transform_indices = @transform_1, window_bounds = array<i64: 128, 128>}, {pipeline_mode = #tpu.pipeline_mode<synchronous>, transform_indices = @transform_2, window_bounds = array<i64: 1, 128>}, {pipeline_mode = #tpu.pipeline_mode<synchronous>, transform_indices = @transform_3, window_bounds = array<i64: 128, 128>}, {pipeline_mode = #tpu.pipeline_mode<synchronous>, transform_indices = @transform_4, window_bounds = array<i64: 1, 128>}, {transform_indices = @transform_5, window_bounds = array<i64: 128, 128>}]} {
    %c0 = arith.constant 0 : index
    %c0_0 = arith.constant 0 : index
    %0 = vector.load %arg1[%c0, %c0_0] : memref<128x128xf32, #tpu.memory_space<vmem>>, vector<128x128xf32>
    %c0_1 = arith.constant 0 : index
    %c0_2 = arith.constant 0 : index
    %1 = vector.load %arg2[%c0_1, %c0_2] : memref<128x128xf32, #tpu.memory_space<vmem>>, vector<128x128xf32>
    %c0_3 = arith.constant 0 : index
    %c0_4 = arith.constant 0 : index
    %2 = vector.load %arg3[%c0_3, %c0_4] : memref<1x128xf32, #tpu.memory_space<vmem>>, vector<1x128xf32>
    %cst = arith.constant dense<0.000000e+00> : vector<128x128xf32>
    %3 = tpu.matmul %0, %1, %cst {dimension_numbers = #tpu.dot_dimension_numbers<[1], [0], [0], [1], [0, 0, 1, 1], [], []>} : vector<128x128xf32>, vector<128x128xf32>, vector<128x128xf32> -> vector<128x128xf32>
    %4 = vector.broadcast %2 : vector<1x128xf32> to vector<128x128xf32>
    %5 = arith.addf %3, %4 : vector<128x128xf32>
    %cst_5 = arith.constant 5.000000e-01 : f32
    %6 = vector.broadcast %cst_5 : f32 to vector<128x128xf32>
    %7 = arith.mulf %6, %5 : vector<128x128xf32>
    %8 = math.tanh %7 : vector<128x128xf32>
    %cst_6 = arith.constant 1.000000e+00 : f32
    %9 = vector.broadcast %cst_6 : f32 to vector<128x128xf32>
    %10 = arith.addf %8, %9 : vector<128x128xf32>
    %cst_7 = arith.constant 5.000000e-01 : f32
    %11 = vector.broadcast %cst_7 : f32 to vector<128x128xf32>
    %12 = arith.mulf %11, %10 : vector<128x128xf32>
    %c0_8 = arith.constant 0 : index
    %c0_9 = arith.constant 0 : index
    %13 = vector.load %arg4[%c0_8, %c0_9] : memref<128x128xf32, #tpu.memory_space<vmem>>, vector<128x128xf32>
    %c0_10 = arith.constant 0 : index
    %c0_11 = arith.constant 0 : index
    %14 = vector.load %arg5[%c0_10, %c0_11] : memref<1x128xf32, #tpu.memory_space<vmem>>, vector<1x128xf32>
    %cst_12 = arith.constant dense<0.000000e+00> : vector<128x128xf32>
    %15 = tpu.matmul %12, %13, %cst_12 {dimension_numbers = #tpu.dot_dimension_numbers<[1], [0], [0], [1], [0, 0, 1, 1], [], []>} : vector<128x128xf32>, vector<128x128xf32>, vector<128x128xf32> -> vector<128x128xf32>
    %16 = vector.broadcast %14 : vector<1x128xf32> to vector<128x128xf32>
    %17 = arith.addf %15, %16 : vector<128x128xf32>
    %cst_13 = arith.constant 5.000000e-01 : f32
    %18 = vector.broadcast %cst_13 : f32 to vector<128x128xf32>
    %19 = arith.mulf %18, %17 : vector<128x128xf32>
    %20 = math.tanh %19 : vector<128x128xf32>
    %cst_14 = arith.constant 1.000000e+00 : f32
    %21 = vector.broadcast %cst_14 : f32 to vector<128x128xf32>
    %22 = arith.addf %20, %21 : vector<128x128xf32>
    %cst_15 = arith.constant 5.000000e-01 : f32
    %23 = vector.broadcast %cst_15 : f32 to vector<128x128xf32>
    %24 = arith.mulf %23, %22 : vector<128x128xf32>
    %c0_16 = arith.constant 0 : index
    %c0_17 = arith.constant 0 : index
    %25 = vector.load %arg6[%c0_16, %c0_17] : memref<128x128xf32, #tpu.memory_space<vmem>>, vector<128x128xf32>
    tpu.vector_store %arg6[%c0_16, %c0_17], %24 {strides = array<i32>} : memref<128x128xf32, #tpu.memory_space<vmem>>, vector<128x128xf32>,
    return
  }
  func.func @transform_0(%arg0: i32) -> (i32, i32) {
    %c0_i32 = arith.constant 0 : i32
    %c0_i32_0 = arith.constant 0 : i32
    return %arg0, %c0_i32 : i32, i32
  }
  func.func @transform_1(%arg0: i32) -> (i32, i32) {
    %c0_i32 = arith.constant 0 : i32
    %c0_i32_0 = arith.constant 0 : i32
    %c0_i32_1 = arith.constant 0 : i32
    return %c0_i32, %c0_i32_0 : i32, i32
  }
  func.func @transform_2(%arg0: i32) -> (i32, i32) {
    %c0_i32 = arith.constant 0 : i32
    %c0_i32_0 = arith.constant 0 : i32
    %c0_i32_1 = arith.constant 0 : i32
    return %c0_i32, %c0_i32_0 : i32, i32
  }
  func.func @transform_3(%arg0: i32) -> (i32, i32) {
    %c0_i32 = arith.constant 0 : i32
    %c0_i32_0 = arith.constant 0 : i32
    %c0_i32_1 = arith.constant 0 : i32
    return %c0_i32, %c0_i32_0 : i32, i32
  }
  func.func @transform_4(%arg0: i32) -> (i32, i32) {
    %c0_i32 = arith.constant 0 : i32
    %c0_i32_0 = arith.constant 0 : i32
    %c0_i32_1 = arith.constant 0 : i32
    return %c0_i32, %c0_i32_0 : i32, i32
  }
  func.func @transform_5(%arg0: i32) -> (i32, i32) {
    %c0_i32 = arith.constant 0 : i32
    %c0_i32_0 = arith.constant 0 : i32
    return %arg0, %c0_i32 : i32, i32
  }
}

</mosaic_0001>

<bundles_post_ra>
// kernel: _fc_forward_padded.1
= control target key start
LH: loop header
LB: loop body
LE: loop exit
PB: predicated region body
PF: predicated region fallthrough
CT: control target
= control target key end

     0   :  { %10 = vsyncpa [#allocation3], 0  ;;  %s1338_s0 = inlined_call_operand.hbm [shape: f32[256,128], index: 0, kind: input, shape index: {}]   ;;  %s1339_s1 = inlined_call_operand.hbm [shape: f32[128,128], index: 1, kind: input, shape index: {}]   ;;  %s1340_s2 = inlined_call_operand.vmem [shape: f32[1,128], index: 2, kind: input, shape index: {}]   ;;  %s1341_s3 = inlined_call_operand.hbm [shape: f32[128,128], index: 3, kind: input, shape index: {}]   ;;  %s1342_s4 = inlined_call_operand.vmem [shape: f32[1,128], index: 4, kind: input, shape index: {}]   ;;  %s1343_s5 = inlined_call_operand.hbm [shape: f32[256,128], index: 5, kind: output, shape index: {}]  }
   0x1   :  { %12 = vsyncpa [#allocation3 + $0x1], 0 }
   0x2   :  { %13 = vsyncpa [#allocation6], 0 }
   0x3   :  { %14 = vsyncpa [#allocation4], 0 }
   0x4   :  { %16 = vsyncpa [#allocation4 + $0x1], 0  ;;  %s1105_s18 = smov 0   ;;  %s1107_s19 = smov 0  }
   0x5   :  { %s1109_s20 = smov 0   ;;  %s1111_s21 = smov 0  }
   0x6 LB: > { %s1126_s22 = sadd.s32 4294967295, %s1067_s21   ;;  %s718_s23 = sadd.s32 4294967294, %s1067_s21   ;;  %s1067_s21 = sphi %s1111_s21, %s1355_s21   ;;  %s1063_s20 = sphi %s1109_s20, %s1354_s20   ;;  %s1059_s19 = sphi %s1107_s19, %s1353_s19   ;;  %s1055_s18 = sphi %s1105_s18, %s1352_s18  }
   0x7   : > { %p42_p0 = scmp.ne.s32.totalorder %s1059_s19, %s1055_s18  ;;  %p43_p1 = scmp.eq.s32.totalorder %s1126_s22, 0 }
   0x8   : > { %p150_p2 = scmp.eq.s32.totalorder %s1126_s22, 1  ;;  %p156_p3 = scmp.eq.s32.totalorder %s718_s23, 1 }
   0x9   : > { %p1135_p4 = por %p43_p1, %p42_p0  ;;  %p719_p5 = scmp.ge.s32.totalorder %s1067_s21, 1 }
   0xa   : > { %p1140_p6 = por %p156_p3, %p42_p0  ;;  %p163_p7 = scmp.lt.s32.totalorder %s1067_s21, 3 }
   0xb   : > { %s174_s28 = sshll.u32 %s1339_s1, 4  ;;  %s1069_s30 = smov [#allocation5]   ;;  %s175_s28 = int_to_ptr.hbm [resolvable:$true] %s174_s28 }
   0xc   : > { %p1148_p8 = pnand %p719_p5, %p163_p7  ;;  %s176_s6 = sshll.u32 %s1069_s30, 4  ;;  %s177_s6 = int_to_ptr.vmem [resolvable:$true] %s176_s6 }
   0xd   : > { %s191_s9 = sshll.u32 %s1341_s3, 4  ;;  %s1344_s10 = smov 128   ;;  %s192_s9 = int_to_ptr.hbm [resolvable:$true] %s191_s9 }
   0xe   : > { %p782_p9 = pneg %p1148_p8  ;;  %s1071_s11 = smov 8  }
   0xf   : > { %s1072_s12 = smov [#allocation7]   ;;  %s1167_s14 = sadd.s32 1, %s1067_s21  }
  0x10   : > { %p783_p10 = pnand %p782_p9, %p43_p1  ;;  %s193_s13 = sshll.u32 %s1072_s12, 4  ;;  %s194_s13 = int_to_ptr.vmem [resolvable:$true] %s193_s13 }
  0x11   : > { %s29_s15 = sadd.s32 1, %s1063_s20  ;;  %s26_s16 = ssub.s32 %s1067_s21, %s1167_s14 }
  0x12   : > { %785 = dma.hbm_to_vmem [thread:$0]  (!%p783_p10), %s175_s28, 2048, %s177_s6, [#allocation6], %s1344_s10, %s1344_s10, %s1071_s11  }
  0x13   : > { %788 = dma.hbm_to_vmem [thread:$0]  (!%p783_p10), %s192_s9, 2048, %s194_s13, [#allocation6], %s1344_s10, %s1344_s10, %s1071_s11  }
  0x14   : > { %p36_p12 = scmp.ne.s32.totalorder %s1063_s20, %s1059_s19  ;;  %p27_p13 = scmp.eq.s32.totalorder %s26_s16, 0 }
  0x15   : > { %p37_p0 = scmp.eq.s32.totalorder %s1067_s21, 0  ;;  %p799_p5 = scmp.lt.s32.totalorder %s1067_s21, 2 }
  0x16   : > { %p1177_p3 = por %p150_p2, %p36_p12  ;;  %s210_s26 = sand.u32 1, %s1063_s20  }
  0x17   : > { %s1183_s23 = scalar_select %p27_p13, %s1063_s20, %s29_s15  }
  0x18   : > { %p38_p7 = por %p37_p0, %p36_p12  ;;  %s723_s27 = sshll.u32 %s210_s26, 7 }
  0x19   : > { %s736_s28 = sshll.u32 %s1067_s21, 7  ;;  %s214_s8 = scalar_lea.vmem [#allocation2], %s723_s27 }
  0x1a   : > { %s219_s7 = scalar_lea.hbm %s1338_s0, %s736_s28  ;;  %s222_s9 = sshll.u32 %s214_s8, 4  ;;  %s223_s9 = int_to_ptr.vmem [resolvable:$true] %s222_s9 }
  0x1b   : > { %s220_s12 = sshll.u32 %s219_s7, 4  ;;  %p1190_p2 = pnand %p799_p5, %p38_p7  ;;  %s221_s12 = int_to_ptr.hbm [resolvable:$true] %s220_s12 }
  0x1c   : > { %s211_s15 = scalar_lea.sflag [#allocation3], %s210_s26  ;;  %s967_s16 = sshra.s32 %s221_s12, 4  ;;  %s968_s16 = int_to_ptr.hbm [resolvable:$true] %s967_s16 }
  0x1d   : > { %s969_s10 = scalar_lea.hbm %s968_s16, 128  ;;  %p971_p10 = pneg %p1190_p2 }
  0x1e   : > { %p970_p9 = scmp.ne.s32.totalorder %s968_s16, %s969_s10  ;;  %s974_s30 = scalar_lea.hbm %s1338_s0, 256 }
  0x1f   : > { %p975_p0 = scmp.lt.s32.totalorder %s968_s16, %s1338_s0  ;;  %p976_p5 = scmp.lt.s32.totalorder %s974_s30, %s969_s10 }
  0x20   : > { %p972_p12 = pnand %p971_p10, %p970_p9 }
  0x21   : > { %p977_p7 = por %p976_p5, %p975_p0 }
  0x22   : > { %p973_p13 = pneg %p972_p12 }
  0x24   : > { %p978_p11 = pnand %p977_p7, %p973_p13 }
  0x26   : > { %981 = shalt.err (!%p978_p11)
}
  0x27   : > { %s1350_s26 = smov 128   ;;  %234 = sbr.rel (%p1148_p8) target bundleno = 433 (0x1b1), region = 40 }
  0x28   : > { %792 = dma.hbm_to_vmem [thread:$0]  (!%p1190_p2), %s221_s12, 2048, %s223_s9, %s211_s15, %s1350_s26, %s1350_s26, %s1071_s11  }
  0x29   : > { %s1210_s8 = sand.u32 (!%p1148_p8), 1, %s1059_s19  }
  0x2a   : > { %s727_s10 = sshll.u32 (!%p1148_p8), %s1210_s8, 7  ;;  %s237_s16 = scalar_lea.sflag (!%p1148_p8), [#allocation3], %s1210_s8 }
  0x2b   : > { %s1216_s28 = scalar_lea.vmem (!%p1148_p8), [#allocation2], %s727_s10 }
  0x2c   : > { %1042 = dma.done.wait (%p1135_p4), %s237_s16, 2048  }
  0x2d   : > { %1044 = vsyncadd (%p1135_p4), %s237_s16, 4294965248 }
  0x2e   : > { %1046 = dma.done.wait (%p43_p1), [#allocation6], 4096  }
  0x2f   : > { %1048 = vsyncadd (%p43_p1), [#allocation6], 4294963200  ;;  %v311_v0 = vld [vmem:[#allocation5 + $0x78] sm:$0xff]  ;;  %v310_v1 = vld [vmem:[#allocation5 + $0x70] sm:$0xff]  ;;  %s1273_s12 = scalar_lea.vmem [#allocation8], %s727_s10  ;;  %s737_s13 = sshll.u32 %s1126_s22, 7 }
  0x30   : > { %738 = vmatpush.msra.mxu2 %v311_v0  ;;  %316 = vmatpush.msra.mxu0 %v311_v0  ;;  %v309_v2 = vld [vmem:[#allocation5 + $0x68] sm:$0xff]  ;;  %v308_v3 = vld [vmem:[#allocation5 + $0x60] sm:$0xff]  ;;  %v307_v4 = vld [vmem:[#allocation5 + $0x58] sm:$0xff]  ;;  %s622_s30 = scalar_lea.hbm %s1343_s5, %s737_s13  ;;  %s623_s6 = sshll.u32 %s1273_s12, 4  ;;  %s624_s6 = int_to_ptr.vmem [resolvable:$true] %s623_s6 }
  0x31   : > { %v306_v5 = vld [vmem:[#allocation5 + $0x50] sm:$0xff]  ;;  %v305_v6 = vld [vmem:[#allocation5 + $0x48] sm:$0xff]  ;;  %v304_v7 = vld [vmem:[#allocation5 + $0x40] sm:$0xff]  ;;  %s625_s7 = sshll.u32 %s622_s30, 4  ;;  %s611_s26 = scalar_lea.sflag [#allocation4], %s1210_s8  ;;  %s626_s7 = int_to_ptr.hbm [resolvable:$true] %s625_s7 }
  0x32   : > { %739 = vmatpush.msra.mxu2 %v310_v1  ;;  %317 = vmatpush.msra.mxu0 %v310_v1  ;;  %v303_v8 = vld [vmem:[#allocation5 + $0x38] sm:$0xff]  ;;  %v302_v9 = vld [vmem:[#allocation5 + $0x30] sm:$0xff]  ;;  %v301_v10 = vld [vmem:[#allocation5 + $0x28] sm:$0xff]  ;;  %s1011_s10 = sshra.s32 %s626_s7, 4  ;;  %s1017_s24 = scalar_lea.hbm %s1343_s5, 256  ;;  %s1012_s10 = int_to_ptr.hbm [resolvable:$true] %s1011_s10 }
  0x33   : > { %v300_v11 = vld [vmem:[#allocation5 + $0x20] sm:$0xff]  ;;  %v299_v12 = vld [vmem:[#allocation5 + $0x18] sm:$0xff]  ;;  %v298_v13 = vld [vmem:[#allocation5 + $0x10] sm:$0xff]  ;;  %s1013_s22 = scalar_lea.hbm %s1012_s10, 128  ;;  %p1018_p11 = scmp.lt.s32.totalorder %s1012_s10, %s1343_s5 }
  0x34   : > { %740 = vmatpush.msra.mxu2 %v309_v2  ;;  %318 = vmatpush.msra.mxu0 %v309_v2  ;;  %v297_v14 = vld [vmem:[#allocation5 + $0x8] sm:$0xff]  ;;  %v296_v15 = vld [vmem:[#allocation5] sm:$0xff]  ;;  %v290_v20 = vld [vmem:[%s1216_s28 + $0x50] sm:$0xff]  ;;  %p1014_p1 = scmp.ne.s32.totalorder %s1012_s10, %s1013_s22  ;;  %p1019_p2 = scmp.lt.s32.totalorder %s1017_s24, %s1013_s22 }
  0x35   : > { %v288_v16 = vld [vmem:[%s1216_s28 + $0x40] sm:$0xff]  ;;  %v289_v18 = vld [vmem:[%s1216_s28 + $0x48] sm:$0xff]  ;;  %v282_v21 = vld [vmem:[%s1216_s28 + $0x10] sm:$0xff] }
  0x36   : > { %741 = vmatpush.msra.mxu2 %v308_v3  ;;  %319 = vmatpush.msra.mxu0 %v308_v3  ;;  %v280_v17 = vld [vmem:[%s1216_s28] sm:$0xff]  ;;  %v281_v19 = vld [vmem:[%s1216_s28 + $0x8] sm:$0xff]  ;;  %v291_v22 = vld [vmem:[%s1216_s28 + $0x58] sm:$0xff]  ;;  %p1015_p4 = pnand %p1014_p1, %p1177_p3  ;;  %p1020_p9 = por %p1019_p2, %p1018_p11 }
  0x37   : > { %v283_v23 = vld [vmem:[%s1216_s28 + $0x18] sm:$0xff]  ;;  %v459_v25 = vld [vmem:[#allocation7 + $0x70] sm:$0xff]  ;;  %v458_v26 = vld [vmem:[#allocation7 + $0x68] sm:$0xff] }
  0x38   : > { %742 = vmatpush.msra.mxu2 %v307_v4  ;;  %320 = vmatpush.msra.mxu0 %v307_v4  ;;  %v460_v24 = vld [vmem:[#allocation7 + $0x78] sm:$0xff]  ;;  %v457_v27 = vld [vmem:[#allocation7 + $0x60] sm:$0xff]  ;;  %v455_v31 = vld [vmem:[#allocation7 + $0x50] sm:$0xff]  ;;  %p1016_p8 = pneg %p1015_p4 }
  0x39   : > { %754 = vmatpush.msra.mxu3 %v460_v24  ;;  %465 = vmatpush.msra.mxu1 %v460_v24  ;;  %v292_v28 = vld [vmem:[%s1216_s28 + $0x60] sm:$0xff]  ;;  %v456_v30 = vld [vmem:[#allocation7 + $0x58] sm:$0xff]  ;;  %v454_v32 = vld [vmem:[#allocation7 + $0x48] sm:$0xff] }
  0x3a   : > { %743 = vmatpush.msra.mxu2 %v306_v5  ;;  %321 = vmatpush.msra.mxu0 %v306_v5  ;;  %v284_v29 = vld [vmem:[%s1216_s28 + $0x20] sm:$0xff]  ;;  %v293_v34 = vld [vmem:[%s1216_s28 + $0x68] sm:$0xff]  ;;  %v294_v36 = vld [vmem:[%s1216_s28 + $0x70] sm:$0xff]  ;;  %p1021_p10 = pnand %p1020_p9, %p1016_p8 }
  0x3b   : > { %755 = vmatpush.msra.mxu3 %v459_v25  ;;  %466 = vmatpush.msra.mxu1 %v459_v25  ;;  %v453_v33 = vld [vmem:[#allocation7 + $0x40] sm:$0xff]  ;;  %v285_v35 = vld [vmem:[%s1216_s28 + $0x28] sm:$0xff]  ;;  %v286_v37 = vld [vmem:[%s1216_s28 + $0x30] sm:$0xff] }
  0x3c   : > { %744 = vmatpush.msra.mxu2 %v305_v6  ;;  %322 = vmatpush.msra.mxu0 %v305_v6  ;;  %v295_v38 = vld [vmem:[%s1216_s28 + $0x78] sm:$0xff]  ;;  %v451_v41 = vld [vmem:[#allocation7 + $0x30] sm:$0xff]  ;;  %v450_v42 = vld [vmem:[#allocation7 + $0x28] sm:$0xff] }
  0x3d   : > { %756 = vmatpush.msra.mxu3 %v458_v26  ;;  %467 = vmatpush.msra.mxu1 %v458_v26  ;;  %v287_v39 = vld [vmem:[%s1216_s28 + $0x38] sm:$0xff]  ;;  %v449_v43 = vld [vmem:[#allocation7 + $0x20] sm:$0xff]  ;;  %v447_v45 = vld [vmem:[#allocation7 + $0x10] sm:$0xff] }
  0x3e   : > { %745 = vmatpush.msra.mxu2 %v304_v7  ;;  %323 = vmatpush.msra.mxu0 %v304_v7  ;;  %v452_v40 = vld [vmem:[#allocation7 + $0x38] sm:$0xff]  ;;  %v446_v46 = vld [vmem:[#allocation7 + $0x8] sm:$0xff]  ;;  %v445_v47 = vld [vmem:[#allocation7] sm:$0xff] }
  0x3f   : > { %757 = vmatpush.msra.mxu3 %v457_v27  ;;  %468 = vmatpush.msra.mxu1 %v457_v27  ;;  %v448_v44 = vld [vmem:[#allocation7 + $0x18] sm:$0xff]  ;;  %v1245_v48 = vld [vmem:[%s1340_s2] ss:$0 sm:$0xff] }
  0x40   : > { %746 = vmatpush.msra.mxu2 %v303_v8  ;;  %324 = vmatpush.msra.mxu0 %v303_v8 }
  0x41   : > { %758 = vmatpush.msra.mxu3 %v456_v30  ;;  %469 = vmatpush.msra.mxu1 %v456_v30 }
  0x42   : > { %747 = vmatpush.msra.mxu2 %v302_v9  ;;  %325 = vmatpush.msra.mxu0 %v302_v9 }
  0x43   : > { %759 = vmatpush.msra.mxu3 %v455_v31  ;;  %470 = vmatpush.msra.mxu1 %v455_v31 }
  0x44   : > { %748 = vmatpush.msra.mxu2 %v301_v10  ;;  %326 = vmatpush.msra.mxu0 %v301_v10 }
  0x45   : > { %760 = vmatpush.msra.mxu3 %v454_v32  ;;  %471 = vmatpush.msra.mxu1 %v454_v32 }
  0x46   : > { %749 = vmatpush.msra.mxu2 %v300_v11  ;;  %327 = vmatpush.msra.mxu0 %v300_v11 }
  0x47   : > { %761 = vmatpush.msra.mxu3 %v453_v33  ;;  %472 = vmatpush.msra.mxu1 %v453_v33 }
  0x48   : > { %750 = vmatpush.msra.mxu2 %v299_v12  ;;  %328 = vmatpush.msra.mxu0 %v299_v12 }
  0x49   : > { %762 = vmatpush.msra.mxu3 %v452_v40  ;;  %473 = vmatpush.msra.mxu1 %v452_v40 }
  0x4a   : > { %751 = vmatpush.msra.mxu2 %v298_v13  ;;  %329 = vmatpush.msra.mxu0 %v298_v13 }
  0x4b   : > { %763 = vmatpush.msra.mxu3 %v451_v41  ;;  %474 = vmatpush.msra.mxu1 %v451_v41 }
  0x4c   : > { %752 = vmatpush.msra.mxu2 %v297_v14  ;;  %330 = vmatpush.msra.mxu0 %v297_v14 }
  0x4d   : > { %764 = vmatpush.msra.mxu3 %v450_v42  ;;  %475 = vmatpush.msra.mxu1 %v450_v42 }
  0x4e   : > { %753 = vmatpush.msra.mxu2 %v296_v15  ;;  %331 = vmatpush.msra.mxu0 %v296_v15 }
  0x4f   : > { %356 = vmatmul.f32.vlgmr.msra.gmra.mxu2 %v288_v16  ;;  %332 = vmatmul.f32.vlgmr.msra.gmra.mxu0 %v280_v17 }
  0x50   : > { %765 = vmatpush.msra.mxu3 %v449_v43  ;;  %476 = vmatpush.msra.mxu1 %v449_v43 }
  0x52   : > { %766 = vmatpush.msra.mxu3 %v448_v44  ;;  %477 = vmatpush.msra.mxu1 %v448_v44 }
  0x54   : > { %767 = vmatpush.msra.mxu3 %v447_v45  ;;  %478 = vmatpush.msra.mxu1 %v447_v45 }
  0x56   : > { %768 = vmatpush.msra.mxu3 %v446_v46  ;;  %479 = vmatpush.msra.mxu1 %v446_v46 }
  0x57   : > { %359 = vmatmul.f32.gmra.mxu2 %v289_v18  ;;  %335 = vmatmul.f32.gmra.mxu0 %v281_v19 }
  0x58   : > { %769 = vmatpush.msra.mxu3 %v445_v47  ;;  %480 = vmatpush.msra.mxu1 %v445_v47 }
  0x5f   : > { %362 = vmatmul.f32.gmra.mxu2 %v290_v20  ;;  %338 = vmatmul.f32.gmra.mxu0 %v282_v21 }
  0x67   : > { %365 = vmatmul.f32.gmra.mxu2 %v291_v22  ;;  %341 = vmatmul.f32.gmra.mxu0 %v283_v23 }
  0x6f   : > { %368 = vmatmul.f32.gmra.mxu2 %v292_v28  ;;  %344 = vmatmul.f32.gmra.mxu0 %v284_v29 }
  0x77   : > { %371 = vmatmul.f32.gmra.mxu2 %v293_v34  ;;  %347 = vmatmul.f32.gmra.mxu0 %v285_v35 }
  0x7f   : > { %374 = vmatmul.f32.gmra.mxu2 %v294_v36  ;;  %350 = vmatmul.f32.gmra.mxu0 %v286_v37 }
  0x87   : > { %377 = vmatmul.f32.gmra.mxu2 %v295_v38  ;;  %353 = vmatmul.f32.gmra.mxu0 %v287_v39 }
  0xcc   : > { %v333_v49 = vpop.f32.mrf.mxu0 }
  0xcd   : > { %v334_v50 = vadd.f32 %v1245_v48, %v333_v49 }
  0xcf   : > { %v381_v51 = vmul.f32 0.5, %v334_v50 }
  0xd1   : > { %843 = vtanh.f32 %v381_v51 }
  0xd2   : > { %v357_v52 = vpop.f32.mrf.mxu2 }
  0xd3   : > { %v358_v53 = vadd.f32 %v1245_v48, %v357_v52 }
  0xd4   : > { %v336_v54 = vpop.f32.mrf.mxu0 }
  0xd5   : > { %v389_v55 = vmul.f32 0.5, %v358_v53  ;;  %v337_v56 = vadd.f32 %v1245_v48, %v336_v54 }
  0xd7   : > { %v844_v57 = vpop.eup %843  ;;  %845 = vtanh.f32 %v389_v55  ;;  %v382_v58 = vmul.f32 0.5, %v337_v56 }
  0xd8   : > { %v413_v59 = vadd.f32 1.0, %v844_v57 }
  0xd9   : > { %847 = vtanh.f32 %v382_v58 }
  0xda   : > { %v360_v60 = vpop.f32.mrf.mxu2  ;;  %v429_v61 = vmul.f32 0.5, %v413_v59 }
  0xdb   : > { %v361_v62 = vadd.f32 %v1245_v48, %v360_v60 }
  0xdc   : > { %v339_v63 = vpop.f32.mrf.mxu0  ;;  %481 = vmatmul.f32.vlgmr.msra.gmra.mxu1 %v429_v61 }
  0xdd   : > { %v846_v0 = vpop.eup %845  ;;  %v390_v1 = vmul.f32 0.5, %v361_v62  ;;  %v340_v2 = vadd.f32 %v1245_v48, %v339_v63 }
  0xde   : > { %v421_v3 = vadd.f32 1.0, %v846_v0 }
  0xdf   : > { %v848_v4 = vpop.eup %847  ;;  %849 = vtanh.f32 %v390_v1  ;;  %v383_v5 = vmul.f32 0.5, %v340_v2 }
  0xe0   : > { %v437_v6 = vmul.f32 0.5, %v421_v3  ;;  %v414_v7 = vadd.f32 1.0, %v848_v4 }
  0xe1   : > { %851 = vtanh.f32 %v383_v5 }
  0xe2   : > { %v363_v8 = vpop.f32.mrf.mxu2  ;;  %505 = vmatmul.f32.vlgmr.msra.gmra.mxu3 %v437_v6  ;;  %v430_v9 = vmul.f32 0.5, %v414_v7 }
  0xe3   : > { %v364_v10 = vadd.f32 %v1245_v48, %v363_v8 }
  0xe4   : > { %v342_v11 = vpop.f32.mrf.mxu0  ;;  %484 = vmatmul.f32.gmra.mxu1 %v430_v9 }
  0xe5   : > { %v850_v12 = vpop.eup %849  ;;  %v391_v13 = vmul.f32 0.5, %v364_v10  ;;  %v343_v14 = vadd.f32 %v1245_v48, %v342_v11 }
  0xe6   : > { %v422_v15 = vadd.f32 1.0, %v850_v12 }
  0xe7   : > { %v852_v16 = vpop.eup %851  ;;  %853 = vtanh.f32 %v391_v13  ;;  %v384_v17 = vmul.f32 0.5, %v343_v14 }
  0xe8   : > { %v438_v18 = vmul.f32 0.5, %v422_v15  ;;  %v415_v19 = vadd.f32 1.0, %v852_v16 }
  0xe9   : > { %855 = vtanh.f32 %v384_v17 }
  0xea   : > { %v366_v20 = vpop.f32.mrf.mxu2  ;;  %508 = vmatmul.f32.gmra.mxu3 %v438_v18  ;;  %v431_v21 = vmul.f32 0.5, %v415_v19 }
  0xeb   : > { %v367_v22 = vadd.f32 %v1245_v48, %v366_v20 }
  0xec   : > { %v345_v23 = vpop.f32.mrf.mxu0  ;;  %487 = vmatmul.f32.gmra.mxu1 %v431_v21 }
  0xed   : > { %v854_v24 = vpop.eup %853  ;;  %v392_v25 = vmul.f32 0.5, %v367_v22  ;;  %v346_v26 = vadd.f32 %v1245_v48, %v345_v23 }
  0xee   : > { %v423_v27 = vadd.f32 1.0, %v854_v24 }
  0xef   : > { %v856_v28 = vpop.eup %855  ;;  %857 = vtanh.f32 %v392_v25  ;;  %v385_v29 = vmul.f32 0.5, %v346_v26 }
  0xf0   : > { %v439_v30 = vmul.f32 0.5, %v423_v27  ;;  %v416_v31 = vadd.f32 1.0, %v856_v28 }
  0xf1   : > { %859 = vtanh.f32 %v385_v29 }
  0xf2   : > { %v369_v32 = vpop.f32.mrf.mxu2  ;;  %511 = vmatmul.f32.gmra.mxu3 %v439_v30  ;;  %v432_v33 = vmul.f32 0.5, %v416_v31 }
  0xf3   : > { %v370_v34 = vadd.f32 %v1245_v48, %v369_v32 }
  0xf4   : > { %v348_v35 = vpop.f32.mrf.mxu0  ;;  %490 = vmatmul.f32.gmra.mxu1 %v432_v33 }
  0xf5   : > { %v858_v36 = vpop.eup %857  ;;  %v393_v37 = vmul.f32 0.5, %v370_v34  ;;  %v349_v38 = vadd.f32 %v1245_v48, %v348_v35 }
  0xf6   : > { %v424_v39 = vadd.f32 1.0, %v858_v36 }
  0xf7   : > { %v860_v40 = vpop.eup %859  ;;  %861 = vtanh.f32 %v393_v37  ;;  %v386_v41 = vmul.f32 0.5, %v349_v38 }
  0xf8   : > { %v440_v42 = vmul.f32 0.5, %v424_v39  ;;  %v417_v43 = vadd.f32 1.0, %v860_v40 }
  0xf9   : > { %863 = vtanh.f32 %v386_v41 }
  0xfa   : > { %v372_v44 = vpop.f32.mrf.mxu2  ;;  %514 = vmatmul.f32.gmra.mxu3 %v440_v42  ;;  %v433_v45 = vmul.f32 0.5, %v417_v43 }
  0xfb   : > { %v373_v46 = vadd.f32 %v1245_v48, %v372_v44 }
  0xfc   : > { %v351_v47 = vpop.f32.mrf.mxu0  ;;  %493 = vmatmul.f32.gmra.mxu1 %v433_v45 }
  0xfd   : > { %v862_v49 = vpop.eup %861  ;;  %v394_v50 = vmul.f32 0.5, %v373_v46  ;;  %v352_v51 = vadd.f32 %v1245_v48, %v351_v47 }
  0xfe   : > { %v425_v52 = vadd.f32 1.0, %v862_v49 }
  0xff   : > { %v864_v53 = vpop.eup %863  ;;  %865 = vtanh.f32 %v394_v50  ;;  %v387_v54 = vmul.f32 0.5, %v352_v51 }
 0x100   : > { %v441_v55 = vmul.f32 0.5, %v425_v52  ;;  %v418_v56 = vadd.f32 1.0, %v864_v53 }
 0x101   : > { %867 = vtanh.f32 %v387_v54 }
 0x102   : > { %v375_v57 = vpop.f32.mrf.mxu2  ;;  %517 = vmatmul.f32.gmra.mxu3 %v441_v55  ;;  %v434_v58 = vmul.f32 0.5, %v418_v56 }
 0x103   : > { %v376_v59 = vadd.f32 %v1245_v48, %v375_v57 }
 0x104   : > { %v354_v60 = vpop.f32.mrf.mxu0  ;;  %496 = vmatmul.f32.gmra.mxu1 %v434_v58 }
 0x105   : > { %v866_v61 = vpop.eup %865  ;;  %v395_v62 = vmul.f32 0.5, %v376_v59  ;;  %v355_v63 = vadd.f32 %v1245_v48, %v354_v60 }
 0x106   : > { %v426_v0 = vadd.f32 1.0, %v866_v61 }
 0x107   : > { %v868_v1 = vpop.eup %867  ;;  %869 = vtanh.f32 %v395_v62  ;;  %v388_v2 = vmul.f32 0.5, %v355_v63 }
 0x108   : > { %v442_v3 = vmul.f32 0.5, %v426_v0  ;;  %v419_v4 = vadd.f32 1.0, %v868_v1 }
 0x109   : > { %871 = vtanh.f32 %v388_v2 }
 0x10a   : > { %v378_v5 = vpop.f32.mrf.mxu2  ;;  %520 = vmatmul.f32.gmra.mxu3 %v442_v3  ;;  %v435_v6 = vmul.f32 0.5, %v419_v4 }
 0x10b   : > { %v379_v7 = vadd.f32 %v1245_v48, %v378_v5  ;;  %v1266_v48 = vld [vmem:[%s1342_s4] ss:$0 sm:$0xff] }
 0x10c   : > { %499 = vmatmul.f32.gmra.mxu1 %v435_v6 }
 0x10d   : > { %v870_v8 = vpop.eup %869  ;;  %v396_v9 = vmul.f32 0.5, %v379_v7 }
 0x10e   : > { %v427_v10 = vadd.f32 1.0, %v870_v8 }
 0x10f   : > { %v872_v11 = vpop.eup %871  ;;  %873 = vtanh.f32 %v396_v9 }
 0x110   : > { %v443_v12 = vmul.f32 0.5, %v427_v10  ;;  %v420_v13 = vadd.f32 1.0, %v872_v11 }
 0x112   : > { %523 = vmatmul.f32.gmra.mxu3 %v443_v12  ;;  %v436_v14 = vmul.f32 0.5, %v420_v13 }
 0x114   : > { %502 = vmatmul.f32.gmra.mxu1 %v436_v14 }
 0x115   : > { %v874_v15 = vpop.eup %873 }
 0x116   : > { %v428_v16 = vadd.f32 1.0, %v874_v15 }
 0x118   : > { %v444_v17 = vmul.f32 0.5, %v428_v16 }
 0x11a   : > { %526 = vmatmul.f32.gmra.mxu3 %v444_v17 }
 0x159   : > { %v482_v18 = vpop.f32.mrf.mxu1 }
 0x15a   : > { %v483_v19 = vadd.f32 %v1266_v48, %v482_v18 }
 0x15c   : > { %v530_v20 = vmul.f32 0.5, %v483_v19 }
 0x15e   : > { %875 = vtanh.f32 %v530_v20 }
 0x161   : > { %v485_v21 = vpop.f32.mrf.mxu1 }
 0x162   : > { %v486_v22 = vadd.f32 %v1266_v48, %v485_v21 }
 0x164   : > { %v876_v23 = vpop.eup %875  ;;  %v531_v24 = vmul.f32 0.5, %v486_v22 }
 0x165   : > { %v562_v25 = vadd.f32 1.0, %v876_v23  ;;  %v506_v26 = vpop.f32.mrf.mxu3 }
 0x166   : > { %v507_v27 = vadd.f32 %v1266_v48, %v506_v26  ;;  %877 = vtanh.f32 %v531_v24 }
 0x167   : > { %v578_v28 = vmul.f32 0.5, %v562_v25 }
 0x168   : > { %v538_v29 = vmul.f32 0.5, %v507_v27 }
 0x169   : > { %594 = vst [vmem:[%s1273_s12] sm:$0xff] %v578_v28  ;;  %v488_v30 = vpop.f32.mrf.mxu1 }
 0x16a   : > { %879 = vtanh.f32 %v538_v29  ;;  %v489_v31 = vadd.f32 %v1266_v48, %v488_v30 }
 0x16c   : > { %v878_v32 = vpop.eup %877  ;;  %v532_v33 = vmul.f32 0.5, %v489_v31 }
 0x16d   : > { %v563_v34 = vadd.f32 1.0, %v878_v32  ;;  %v509_v35 = vpop.f32.mrf.mxu3 }
 0x16e   : > { %v510_v36 = vadd.f32 %v1266_v48, %v509_v35  ;;  %881 = vtanh.f32 %v532_v33 }
 0x16f   : > { %v579_v37 = vmul.f32 0.5, %v563_v34 }
 0x170   : > { %v880_v38 = vpop.eup %879  ;;  %v539_v39 = vmul.f32 0.5, %v510_v36 }
 0x171   : > { %v570_v40 = vadd.f32 1.0, %v880_v38  ;;  %595 = vst [vmem:[%s1273_s12 + $0x8] sm:$0xff] %v579_v37  ;;  %v491_v41 = vpop.f32.mrf.mxu1 }
 0x172   : > { %883 = vtanh.f32 %v539_v39  ;;  %v492_v42 = vadd.f32 %v1266_v48, %v491_v41 }
 0x173   : > { %v586_v43 = vmul.f32 0.5, %v570_v40 }
 0x174   : > { %v882_v44 = vpop.eup %881  ;;  %v533_v45 = vmul.f32 0.5, %v492_v42 }
 0x175   : > { %602 = vst [vmem:[%s1273_s12 + $0x40] sm:$0xff] %v586_v43  ;;  %v564_v46 = vadd.f32 1.0, %v882_v44  ;;  %v512_v47 = vpop.f32.mrf.mxu3 }
 0x176   : > { %v513_v49 = vadd.f32 %v1266_v48, %v512_v47  ;;  %885 = vtanh.f32 %v533_v45 }
 0x177   : > { %v580_v50 = vmul.f32 0.5, %v564_v46 }
 0x178   : > { %v884_v51 = vpop.eup %883  ;;  %v540_v52 = vmul.f32 0.5, %v513_v49 }
 0x179   : > { %v571_v53 = vadd.f32 1.0, %v884_v51  ;;  %596 = vst [vmem:[%s1273_s12 + $0x10] sm:$0xff] %v580_v50  ;;  %v494_v54 = vpop.f32.mrf.mxu1 }
 0x17a   : > { %887 = vtanh.f32 %v540_v52  ;;  %v495_v55 = vadd.f32 %v1266_v48, %v494_v54 }
 0x17b   : > { %v587_v56 = vmul.f32 0.5, %v571_v53 }
 0x17c   : > { %v886_v57 = vpop.eup %885  ;;  %v534_v58 = vmul.f32 0.5, %v495_v55 }
 0x17d   : > { %603 = vst [vmem:[%s1273_s12 + $0x48] sm:$0xff] %v587_v56  ;;  %v565_v59 = vadd.f32 1.0, %v886_v57  ;;  %v515_v60 = vpop.f32.mrf.mxu3 }
 0x17e   : > { %v516_v61 = vadd.f32 %v1266_v48, %v515_v60  ;;  %889 = vtanh.f32 %v534_v58 }
 0x17f   : > { %v581_v62 = vmul.f32 0.5, %v565_v59 }
 0x180   : > { %v888_v63 = vpop.eup %887  ;;  %v541_v0 = vmul.f32 0.5, %v516_v61 }
 0x181   : > { %v572_v1 = vadd.f32 1.0, %v888_v63  ;;  %597 = vst [vmem:[%s1273_s12 + $0x18] sm:$0xff] %v581_v62  ;;  %v497_v2 = vpop.f32.mrf.mxu1 }
 0x182   : > { %891 = vtanh.f32 %v541_v0  ;;  %v498_v3 = vadd.f32 %v1266_v48, %v497_v2 }
 0x183   : > { %v588_v4 = vmul.f32 0.5, %v572_v1 }
 0x184   : > { %v890_v5 = vpop.eup %889  ;;  %v535_v6 = vmul.f32 0.5, %v498_v3 }
 0x185   : > { %604 = vst [vmem:[%s1273_s12 + $0x50] sm:$0xff] %v588_v4  ;;  %v566_v7 = vadd.f32 1.0, %v890_v5  ;;  %v518_v8 = vpop.f32.mrf.mxu3 }
 0x186   : > { %v519_v9 = vadd.f32 %v1266_v48, %v518_v8  ;;  %893 = vtanh.f32 %v535_v6 }
 0x187   : > { %v582_v10 = vmul.f32 0.5, %v566_v7 }
 0x188   : > { %v892_v11 = vpop.eup %891  ;;  %v542_v12 = vmul.f32 0.5, %v519_v9 }
 0x189   : > { %v573_v13 = vadd.f32 1.0, %v892_v11  ;;  %598 = vst [vmem:[%s1273_s12 + $0x20] sm:$0xff] %v582_v10  ;;  %v500_v14 = vpop.f32.mrf.mxu1 }
 0x18a   : > { %895 = vtanh.f32 %v542_v12  ;;  %v501_v15 = vadd.f32 %v1266_v48, %v500_v14 }
 0x18b   : > { %v589_v16 = vmul.f32 0.5, %v573_v13 }
 0x18c   : > { %v894_v17 = vpop.eup %893  ;;  %v536_v18 = vmul.f32 0.5, %v501_v15 }
 0x18d   : > { %605 = vst [vmem:[%s1273_s12 + $0x58] sm:$0xff] %v589_v16  ;;  %v567_v19 = vadd.f32 1.0, %v894_v17  ;;  %v521_v20 = vpop.f32.mrf.mxu3 }
 0x18e   : > { %v522_v21 = vadd.f32 %v1266_v48, %v521_v20  ;;  %897 = vtanh.f32 %v536_v18 }
 0x18f   : > { %v583_v22 = vmul.f32 0.5, %v567_v19 }
 0x190   : > { %v896_v23 = vpop.eup %895  ;;  %v543_v24 = vmul.f32 0.5, %v522_v21 }
 0x191   : > { %v574_v25 = vadd.f32 1.0, %v896_v23  ;;  %599 = vst [vmem:[%s1273_s12 + $0x28] sm:$0xff] %v583_v22  ;;  %v503_v26 = vpop.f32.mrf.mxu1 }
 0x192   : > { %899 = vtanh.f32 %v543_v24  ;;  %v504_v27 = vadd.f32 %v1266_v48, %v503_v26 }
 0x193   : > { %v590_v28 = vmul.f32 0.5, %v574_v25 }
 0x194   : > { %v898_v29 = vpop.eup %897  ;;  %v537_v30 = vmul.f32 0.5, %v504_v27 }
 0x195   : > { %606 = vst [vmem:[%s1273_s12 + $0x60] sm:$0xff] %v590_v28  ;;  %v568_v31 = vadd.f32 1.0, %v898_v29  ;;  %v524_v32 = vpop.f32.mrf.mxu3 }
 0x196   : > { %v525_v33 = vadd.f32 %v1266_v48, %v524_v32  ;;  %901 = vtanh.f32 %v537_v30 }
 0x197   : > { %v584_v34 = vmul.f32 0.5, %v568_v31 }
 0x198   : > { %v900_v35 = vpop.eup %899  ;;  %v544_v36 = vmul.f32 0.5, %v525_v33 }
 0x199   : > { %v575_v37 = vadd.f32 1.0, %v900_v35  ;;  %600 = vst [vmem:[%s1273_s12 + $0x30] sm:$0xff] %v584_v34 }
 0x19a   : > { %903 = vtanh.f32 %v544_v36 }
 0x19b   : > { %v591_v38 = vmul.f32 0.5, %v575_v37 }
 0x19c   : > { %v902_v39 = vpop.eup %901 }
 0x19d   : > { %607 = vst [vmem:[%s1273_s12 + $0x68] sm:$0xff] %v591_v38  ;;  %v569_v40 = vadd.f32 1.0, %v902_v39  ;;  %v527_v41 = vpop.f32.mrf.mxu3 }
 0x19e   : > { %v528_v42 = vadd.f32 %v1266_v48, %v527_v41 }
 0x19f   : > { %v585_v43 = vmul.f32 0.5, %v569_v40 }
 0x1a0   : > { %v904_v44 = vpop.eup %903  ;;  %v545_v45 = vmul.f32 0.5, %v528_v42 }
 0x1a1   : > { %v576_v46 = vadd.f32 1.0, %v904_v44  ;;  %601 = vst [vmem:[%s1273_s12 + $0x38] sm:$0xff] %v585_v43 }
 0x1a2   : > { %905 = vtanh.f32 %v545_v45 }
 0x1a3   : > { %v592_v47 = vmul.f32 0.5, %v576_v46 }
 0x1a5   : > { %608 = vst [vmem:[%s1273_s12 + $0x70] sm:$0xff] %v592_v47 }
 0x1a8   : > { %v906_v49 = vpop.eup %905 }
 0x1a9   : > { %v577_v48 = vadd.f32 1.0, %v906_v49 }
 0x1ab   : > { %v593_v50 = vmul.f32 0.5, %v577_v48 }
 0x1ad   : > { %609 = vst [vmem:[%s1273_s12 + $0x78] sm:$0xff] %v593_v50 }
 0x1ae   : > { %1024 = shalt.err (!%p1021_p10)
}
 0x1af   : > { %s1073_s8 = smov 128   ;;  %s1074_s9 = smov 8  }
 0x1b0   : > { %780 = dma.vmem_to_hbm [thread:$0]  (%p1177_p3), %s624_s6, 2048, %s626_s7, %s611_s26, %s1073_s8, %s1073_s8, %s1074_s9  }
 0x1b1 PF: > { %s640_s12 = sand.u32 1, %s1055_s18   ;;  %p1351_p12 = scmp.ge.s32.totalorder %s1067_s21, 2 }
 0x1b2   : > { %s641_s13 = scalar_lea.sflag [#allocation4], %s640_s12 }
 0x1b3   : > { %p794_p13 = pnand %p1351_p12, %p1140_p6 }
 0x1b5   : > { %p795_p0 = pneg %p794_p13 }
 0x1b7   : > { %1050 = dma.done.wait (%p795_p0), %s641_s13, 2048  }
 0x1b8   : > { %1052 = vsyncadd (%p795_p0), %s641_s13, 4294965248  ;;  %p19_p5 = scmp.ge.s32.totalorder %s1167_s14, 4   ;;  %s1352_s18 = smov %s1059_s19 }
 0x1b9   : > { %s1353_s19 = smov %s1063_s20  ;;  %s1354_s20 = smov %s1183_s23 }
 0x1ba   : > { %s1355_s21 = smov %s1167_s14  ;;  %21 = sbr.rel (!%p19_p5) target bundleno = 6 (0x6), region = 93 }
 0x1bf   :  { %647 = vsyncpa [#allocation3], 1 }
 0x1c0   :  { %649 = vsyncpa [#allocation3 + $0x1], 1 }
 0x1c1   :  { %650 = vsyncpa [#allocation6], 1 }
 0x1c2   :  { %651 = vsyncpa [#allocation4], 1 }
 0x1c3   :  { %653 = vsyncpa [#allocation4 + $0x1], 1 }

</bundles_post_ra>
